<compile_context>
chip_gen: v5e
topology: v5e:2x2
jax: 0.10.0
libtpu: 0.0.40
codegen_flags: <defaults>
</compile_context>

<pallas_src>
import functools

import jax
import jax.numpy as jnp
from jax.experimental import pallas as pl
from jax.experimental.pallas import tpu as pltpu


_MASK_VALUE = -1e30  # finite "minus infinity" for masked (padded) keys


def _round_up(x, m):
    return (x + m - 1) // m * m


# ----------------------------------------------------------------------------
# Linear (x @ W + b) kernel — used for the qkv projection and output projection
# ----------------------------------------------------------------------------
def _linear_kernel(x_ref, w_ref, b_ref, o_ref):
    acc = jnp.dot(x_ref[...], w_ref[...], preferred_element_type=jnp.float32)
    o_ref[...] = (acc + b_ref[...]).astype(o_ref.dtype)


def _linear_pallas(x2, w, b, out_dtype, tm_max=256):
    """x2: (M, K) @ w: (K, N) + b: (N,) -> (M, N). Rows padded to the tile."""
    M, K = x2.shape
    N = w.shape[1]
    tm = min(tm_max, _round_up(M, 8))
    M_pad = _round_up(M, tm)
    if M_pad != M:
        x2 = jnp.pad(x2, ((0, M_pad - M), (0, 0)))
    b2 = b.reshape(1, N).astype(jnp.float32)  # bias added in f32 epilogue

    cost = pl.CostEstimate(
        flops=2 * M_pad * K * N,
        transcendentals=0,
        bytes_accessed=(x2.size * x2.dtype.itemsize
                        + w.size * w.dtype.itemsize
                        + b2.size * 4
                        + M_pad * N * jnp.dtype(out_dtype).itemsize),
    )

    out = pl.pallas_call(
        _linear_kernel,
        out_shape=jax.ShapeDtypeStruct((M_pad, N), out_dtype),
        grid_spec=pltpu.PrefetchScalarGridSpec(
            num_scalar_prefetch=0,
            grid=(M_pad // tm,),
            in_specs=[
                pl.BlockSpec((tm, K), lambda i: (i, 0)),      # activation tile
                # TODO(synk): for production dims (e.g. 1024) add a K-tiled
                # "arbitrary" grid axis + VMEM accumulator so weights need not
                # be fully resident (v7x VMEM is 64 MiB).
                pl.BlockSpec((K, N), lambda i: (0, 0)),        # full weight
                pl.BlockSpec((1, N), lambda i: (0, 0)),        # bias
            ],
            out_specs=pl.BlockSpec((tm, N), lambda i: (i, 0)),
        ),
        compiler_params=pltpu.CompilerParams(
            dimension_semantics=("parallel",)),
        cost_estimate=cost,
    )(x2, w, b2)
    return out[:M] if M_pad != M else out


# ----------------------------------------------------------------------------
# Flash-attention forward kernel (online softmax), one (batch*head) per block
# ----------------------------------------------------------------------------
def _flash_attn_kernel(q_ref, k_ref, v_ref, o_ref, m_sc, l_sc, acc_sc,
                       *, scale, kv_len, tk, needs_mask):
    ki = pl.program_id(2)

    @pl.when(ki == 0)
    def _():
        m_sc[...] = jnp.full_like(m_sc, -jnp.inf)
        l_sc[...] = jnp.zeros_like(l_sc)
        acc_sc[...] = jnp.zeros_like(acc_sc)

    # scores: (1, tq, tk) in f32
    s = jnp.einsum("bqd,bkd->bqk", q_ref[...], k_ref[...],
                   preferred_element_type=jnp.float32) * scale
    if needs_mask:
        key_idx = ki * tk + jax.lax.broadcasted_iota(jnp.int32, s.shape, 2)
        s = jnp.where(key_idx < kv_len, s, _MASK_VALUE)

    m_prev = m_sc[...]
    m_new = jnp.maximum(m_prev, s.max(axis=-1, keepdims=True))
    alpha = jnp.exp(m_prev - m_new)
    p = jnp.exp(s - m_new)
    l_sc[...] = alpha * l_sc[...] + p.sum(axis=-1, keepdims=True)
    acc_sc[...] = alpha * acc_sc[...] + jnp.einsum(
        "bqk,bkd->bqd", p.astype(v_ref.dtype), v_ref[...],
        preferred_element_type=jnp.float32)
    m_sc[...] = m_new

    @pl.when(ki == pl.num_programs(2) - 1)
    def _():
        o_ref[...] = (acc_sc[...] / l_sc[...]).astype(o_ref.dtype)


# ----------------------------------------------------------------------------
# Full Attention forward
# ----------------------------------------------------------------------------
@functools.partial(jax.jit, static_argnames=("num_heads", "compute_dtype",
                                             "tm_max", "t_attn_max"))
def attention_pallas(x, w_qkv, w_proj, b_proj, *, num_heads=8,
                     compute_dtype=jnp.bfloat16, tm_max=256, t_attn_max=128):
    """x: (B, N, C). Weights stored transposed: w_qkv (C, 3C), w_proj (C, C)."""
    B, N, C = x.shape
    H = num_heads
    Dh = C // H
    scale = float(Dh) ** -0.5

    x2 = x.reshape(B * N, C).astype(compute_dtype)
    w_qkv_c = w_qkv.astype(compute_dtype)
    w_proj_c = w_proj.astype(compute_dtype)

    # --- qkv projection (qkv_bias=False -> zero bias) ---
    qkv = _linear_pallas(x2, w_qkv_c, jnp.zeros((3 * C,), jnp.float32),
                         compute_dtype, tm_max)                   # (B*N, 3C)

    # split 'b n (k3 h d)' -> per-head (B*H, N, Dh)
    qkv = qkv.reshape(B, N, 3, H, Dh)
    q = qkv[:, :, 0].transpose(0, 2, 1, 3).reshape(B * H, N, Dh)
    k = qkv[:, :, 1].transpose(0, 2, 1, 3).reshape(B * H, N, Dh)
    v = qkv[:, :, 2].transpose(0, 2, 1, 3).reshape(B * H, N, Dh)

    # --- flash attention ---
    t = min(t_attn_max, _round_up(N, 8))
    N_pad = _round_up(N, t)
    if N_pad != N:
        pad = ((0, 0), (0, N_pad - N), (0, 0))
        q, k, v = jnp.pad(q, pad), jnp.pad(k, pad), jnp.pad(v, pad)

    BH = B * H
    kernel = functools.partial(_flash_attn_kernel, scale=scale, kv_len=N,
                               tk=t, needs_mask=(N_pad != N))
    cost = pl.CostEstimate(
        flops=4 * BH * N_pad * N_pad * Dh,
        transcendentals=BH * N_pad * N_pad,
        bytes_accessed=4 * BH * N_pad * Dh * jnp.dtype(compute_dtype).itemsize,
    )
    ctx = pl.pallas_call(
        kernel,
        out_shape=jax.ShapeDtypeStruct((BH, N_pad, Dh), compute_dtype),
        grid_spec=pltpu.PrefetchScalarGridSpec(
            num_scalar_prefetch=0,
            grid=(BH, N_pad // t, N_pad // t),
            in_specs=[
                pl.BlockSpec((1, t, Dh), lambda b, qi, ki: (b, qi, 0)),  # q
                pl.BlockSpec((1, t, Dh), lambda b, qi, ki: (b, ki, 0)),  # k
                pl.BlockSpec((1, t, Dh), lambda b, qi, ki: (b, ki, 0)),  # v
            ],
            out_specs=pl.BlockSpec((1, t, Dh), lambda b, qi, ki: (b, qi, 0)),
            scratch_shapes=[
                pltpu.VMEM((1, t, 1), jnp.float32),   # running max m
                pltpu.VMEM((1, t, 1), jnp.float32),   # running denom l
                pltpu.VMEM((1, t, Dh), jnp.float32),  # output accumulator
            ],
        ),
        compiler_params=pltpu.CompilerParams(
            dimension_semantics=("parallel", "parallel", "arbitrary")),
        cost_estimate=cost,
    )(q, k, v)

    # merge heads: (B*H, N, Dh) -> (B*N, C)
    ctx = ctx[:, :N, :].reshape(B, H, N, Dh).transpose(0, 2, 1, 3)
    ctx = ctx.reshape(B * N, C).astype(compute_dtype)

    # --- output projection (bias=True) ---
    out = _linear_pallas(ctx, w_proj_c, b_proj, x.dtype, tm_max)  # (B*N, C)
    return out.reshape(B, N, C)


# ----------------------------------------------------------------------------
# Pure-JAX reference (math mode of the PyTorch module) + params
# ----------------------------------------------------------------------------
def attention_reference(x, w_qkv, w_proj, b_proj, num_heads):
    B, N, C = x.shape
    H = num_heads
    Dh = C // H
    scale = float(Dh) ** -0.5
    qkv = x @ w_qkv                                   # (B, N, 3C)
    qkv = qkv.reshape(B, N, 3, H, Dh)
    q = jnp.moveaxis(qkv[:, :, 0], 2, 1)              # (B, H, N, Dh)
    k = jnp.moveaxis(qkv[:, :, 1], 2, 1)
    v = jnp.moveaxis(qkv[:, :, 2], 2, 1)
    attn = jnp.einsum("bhqd,bhkd->bhqk", q, k) * scale
    attn = jax.nn.softmax(attn, axis=-1)
    ctx = jnp.einsum("bhqk,bhkd->bhqd", attn, v)
    ctx = jnp.moveaxis(ctx, 1, 2).reshape(B, N, C)
    return ctx @ w_proj + b_proj


def init_attention_params(key, dim, dtype=jnp.float32):
    """Deterministic synthetic init. Weights stored transposed: (in, out)."""
    k1, k2, k3 = jax.random.split(key, 3)
    s = dim ** -0.5
    w_qkv = jax.random.uniform(k1, (dim, 3 * dim), dtype, -s, s)
    w_proj = jax.random.uniform(k2, (dim, dim), dtype, -s, s)
    b_proj = jax.random.uniform(k3, (dim,), dtype, -s, s)
    return w_qkv, w_proj, b_proj


if __name__ == "__main__":
    B, N, dim, heads = 2, 8, 64, 8   # head_dim = 8

    key = jax.random.PRNGKey(0)
    kx, kp = jax.random.split(key)
    x = jax.random.normal(kx, (B, N, dim), jnp.float32)
    w_qkv, w_proj, b_proj = init_attention_params(kp, dim)

    y_ref = attention_reference(x, w_qkv, w_proj, b_proj, heads)

    # strict numerical check with f32 operands
    y32 = attention_pallas(x, w_qkv, w_proj, b_proj, num_heads=heads,
                           compute_dtype=jnp.float32)
    y32 = jax.block_until_ready(y32)
    assert y32.shape == (B, N, dim)
    assert jnp.allclose(y32, y_ref, atol=1e-4, rtol=1e-4), "f32 mismatch"

    # performance path: bf16 MXU operands, f32 accumulation
    y16 = attention_pallas(x, w_qkv, w_proj, b_proj, num_heads=heads,
                           compute_dtype=jnp.bfloat16)
    y16 = jax.block_until_ready(y16)
    assert y16.shape == (B, N, dim)
    assert jnp.allclose(y16, y_ref, atol=5e-2, rtol=5e-2), "bf16 mismatch"

    print("KERNEL_OK")
</pallas_src>

<mosaic_0001>
module attributes {stable_mosaic.version = 11 : i64} {
  func.func @_linear_kernel(%arg0: i32, %arg1: memref<16x64xf32, #tpu.memory_space<vmem>>, %arg2: memref<64x192xf32, #tpu.memory_space<vmem>>, %arg3: memref<1x192xf32, #tpu.memory_space<vmem>>, %arg4: memref<16x192xf32, #tpu.memory_space<vmem>>) attributes {dimension_semantics = [#tpu.dimension_semantics<parallel>], iteration_bounds = array<i64: 1>, scalar_prefetch = 0 : i64, scratch_operands = 0 : i64, tpu.core_type = #tpu.core_type<tc>, window_params = [{transform_indices = @transform_0, window_bounds = array<i64: 16, 64>}, {pipeline_mode = #tpu.pipeline_mode<synchronous>, transform_indices = @transform_1, window_bounds = array<i64: 64, 192>}, {pipeline_mode = #tpu.pipeline_mode<synchronous>, transform_indices = @transform_2, window_bounds = array<i64: 1, 192>}, {transform_indices = @transform_3, window_bounds = array<i64: 16, 192>}]} {
    %c0 = arith.constant 0 : index
    %c0_0 = arith.constant 0 : index
    %0 = vector.load %arg1[%c0, %c0_0] : memref<16x64xf32, #tpu.memory_space<vmem>>, vector<16x64xf32>
    %c0_1 = arith.constant 0 : index
    %c0_2 = arith.constant 0 : index
    %1 = vector.load %arg2[%c0_1, %c0_2] : memref<64x192xf32, #tpu.memory_space<vmem>>, vector<64x192xf32>
    %cst = arith.constant dense<0.000000e+00> : vector<16x192xf32>
    %2 = tpu.matmul %0, %1, %cst {dimension_numbers = #tpu.dot_dimension_numbers<[1], [0], [0], [1], [0, 0, 1, 1], [], []>} : vector<16x64xf32>, vector<64x192xf32>, vector<16x192xf32> -> vector<16x192xf32>
    %c0_3 = arith.constant 0 : index
    %c0_4 = arith.constant 0 : index
    %3 = vector.load %arg3[%c0_3, %c0_4] : memref<1x192xf32, #tpu.memory_space<vmem>>, vector<1x192xf32>
    %4 = vector.broadcast %3 : vector<1x192xf32> to vector<16x192xf32>
    %5 = arith.addf %2, %4 : vector<16x192xf32>
    %c0_5 = arith.constant 0 : index
    %c0_6 = arith.constant 0 : index
    %6 = vector.load %arg4[%c0_5, %c0_6] : memref<16x192xf32, #tpu.memory_space<vmem>>, vector<16x192xf32>
    tpu.vector_store %arg4[%c0_5, %c0_6], %5 {strides = array<i32>} : memref<16x192xf32, #tpu.memory_space<vmem>>, vector<16x192xf32>,
    return
  }
  func.func @transform_0(%arg0: i32) -> (i32, i32) {
    %c0_i32 = arith.constant 0 : i32
    %c0_i32_0 = arith.constant 0 : i32
    return %arg0, %c0_i32 : i32, i32
  }
  func.func @transform_1(%arg0: i32) -> (i32, i32) {
    %c0_i32 = arith.constant 0 : i32
    %c0_i32_0 = arith.constant 0 : i32
    %c0_i32_1 = arith.constant 0 : i32
    return %c0_i32, %c0_i32_0 : i32, i32
  }
  func.func @transform_2(%arg0: i32) -> (i32, i32) {
    %c0_i32 = arith.constant 0 : i32
    %c0_i32_0 = arith.constant 0 : i32
    %c0_i32_1 = arith.constant 0 : i32
    return %c0_i32, %c0_i32_0 : i32, i32
  }
  func.func @transform_3(%arg0: i32) -> (i32, i32) {
    %c0_i32 = arith.constant 0 : i32
    %c0_i32_0 = arith.constant 0 : i32
    return %arg0, %c0_i32 : i32, i32
  }
}

module attributes {stable_mosaic.version = 11 : i64} {
  func.func @_flash_attn_kernel(%arg0: i32, %arg1: i32, %arg2: i32, %arg3: memref<1x8x8xf32, #tpu.memory_space<vmem>>, %arg4: memref<1x8x8xf32, #tpu.memory_space<vmem>>, %arg5: memref<1x8x8xf32, #tpu.memory_space<vmem>>, %arg6: memref<1x8x8xf32, #tpu.memory_space<vmem>>, %arg7: memref<1x8x1xf32, #tpu.memory_space<vmem>>, %arg8: memref<1x8x1xf32, #tpu.memory_space<vmem>>, %arg9: memref<1x8x8xf32, #tpu.memory_space<vmem>>) attributes {dimension_semantics = [#tpu.dimension_semantics<parallel>, #tpu.dimension_semantics<parallel>, #tpu.dimension_semantics<arbitrary>], iteration_bounds = array<i64: 16, 1, 1>, scalar_prefetch = 0 : i64, scratch_operands = 3 : i64, tpu.core_type = #tpu.core_type<tc>, window_params = [{transform_indices = @transform_0, window_bounds = array<i64: 1, 8, 8>}, {transform_indices = @transform_1, window_bounds = array<i64: 1, 8, 8>}, {transform_indices = @transform_2, window_bounds = array<i64: 1, 8, 8>}, {transform_indices = @transform_3, window_bounds = array<i64: 1, 8, 8>}]} {
    %c0_i32 = arith.constant 0 : i32
    %0 = arith.cmpi eq, %arg2, %c0_i32 : i32
    %1 = arith.extui %0 : i1 to i32
    %c0_i32_0 = arith.constant 0 : i32
    %2 = arith.cmpi ne, %1, %c0_i32_0 : i32
    scf.if %2 {
      %cst_33 = arith.constant 0xFF800000 : f32
      %34 = vector.broadcast %cst_33 : f32 to vector<1x8x1xf32>
      %c0_34 = arith.constant 0 : index
      %c0_35 = arith.constant 0 : index
      %c0_36 = arith.constant 0 : index
      %35 = vector.load %arg7[%c0_34, %c0_35, %c0_36] : memref<1x8x1xf32, #tpu.memory_space<vmem>>, vector<1x8x1xf32>
      tpu.vector_store %arg7[%c0_34, %c0_35, %c0_36], %34 {strides = array<i32>} : memref<1x8x1xf32, #tpu.memory_space<vmem>>, vector<1x8x1xf32>,
      %cst_37 = arith.constant 0.000000e+00 : f32
      %36 = vector.broadcast %cst_37 : f32 to vector<1x8x1xf32>
      %c0_38 = arith.constant 0 : index
      %c0_39 = arith.constant 0 : index
      %c0_40 = arith.constant 0 : index
      %37 = vector.load %arg8[%c0_38, %c0_39, %c0_40] : memref<1x8x1xf32, #tpu.memory_space<vmem>>, vector<1x8x1xf32>
      tpu.vector_store %arg8[%c0_38, %c0_39, %c0_40], %36 {strides = array<i32>} : memref<1x8x1xf32, #tpu.memory_space<vmem>>, vector<1x8x1xf32>,
      %cst_41 = arith.constant 0.000000e+00 : f32
      %38 = vector.broadcast %cst_41 : f32 to vector<1x8x8xf32>
      %c0_42 = arith.constant 0 : index
      %c0_43 = arith.constant 0 : index
      %c0_44 = arith.constant 0 : index
      %39 = vector.load %arg9[%c0_42, %c0_43, %c0_44] : memref<1x8x8xf32, #tpu.memory_space<vmem>>, vector<1x8x8xf32>
      tpu.vector_store %arg9[%c0_42, %c0_43, %c0_44], %38 {strides = array<i32>} : memref<1x8x8xf32, #tpu.memory_space<vmem>>, vector<1x8x8xf32>,
    } else {
    }
    %c0 = arith.constant 0 : index
    %c0_1 = arith.constant 0 : index
    %c0_2 = arith.constant 0 : index
    %3 = vector.load %arg3[%c0, %c0_1, %c0_2] : memref<1x8x8xf32, #tpu.memory_space<vmem>>, vector<1x8x8xf32>
    %c0_3 = arith.constant 0 : index
    %c0_4 = arith.constant 0 : index
    %c0_5 = arith.constant 0 : index
    %4 = vector.load %arg4[%c0_3, %c0_4, %c0_5] : memref<1x8x8xf32, #tpu.memory_space<vmem>>, vector<1x8x8xf32>
    "tpu.trace_start"() <{level = 10 : i32, message = "bqd,bkd->bqk"}> : () -> ()
    %cst = arith.constant dense<0.000000e+00> : vector<1x8x8xf32>
    %5 = tpu.matmul %3, %4, %cst {dimension_numbers = #tpu.dot_dimension_numbers<[2], [2], [1], [1], [0, 0, 0, 1, 1, 1], [0], [0]>} : vector<1x8x8xf32>, vector<1x8x8xf32>, vector<1x8x8xf32> -> vector<1x8x8xf32>
    "tpu.trace_stop"() : () -> ()
    %cst_6 = arith.constant 0.353553385 : f32
    %6 = vector.broadcast %cst_6 : f32 to vector<1x8x8xf32>
    %7 = arith.mulf %5, %6 : vector<1x8x8xf32>
    %c0_7 = arith.constant 0 : index
    %c0_8 = arith.constant 0 : index
    %c0_9 = arith.constant 0 : index
    %8 = vector.load %arg7[%c0_7, %c0_8, %c0_9] : memref<1x8x1xf32, #tpu.memory_space<vmem>>, vector<1x8x1xf32>
    %cst_10 = arith.constant dense<0xFF800000> : vector<1x8xf32>
    %9 = vector.multi_reduction <maximumf>, %7, %cst_10 [2] : vector<1x8x8xf32> to vector<1x8xf32>
    %10 = vector.shape_cast %9 : vector<1x8xf32> to vector<1x8x1xf32>
    %11 = arith.maximumf %8, %10 : vector<1x8x1xf32>
    %12 = arith.subf %8, %11 : vector<1x8x1xf32>
    %13 = math.exp %12 : vector<1x8x1xf32>
    %14 = vector.broadcast %11 : vector<1x8x1xf32> to vector<1x8x8xf32>
    %15 = arith.subf %7, %14 : vector<1x8x8xf32>
    %16 = math.exp %15 : vector<1x8x8xf32>
    %c0_11 = arith.constant 0 : index
    %c0_12 = arith.constant 0 : index
    %c0_13 = arith.constant 0 : index
    %17 = vector.load %arg8[%c0_11, %c0_12, %c0_13] : memref<1x8x1xf32, #tpu.memory_space<vmem>>, vector<1x8x1xf32>
    %18 = arith.mulf %13, %17 : vector<1x8x1xf32>
    %cst_14 = arith.constant dense<0.000000e+00> : vector<1x8xf32>
    %19 = vector.multi_reduction <add>, %16, %cst_14 [2] : vector<1x8x8xf32> to vector<1x8xf32>
    %20 = vector.shape_cast %19 : vector<1x8xf32> to vector<1x8x1xf32>
    %21 = arith.addf %18, %20 : vector<1x8x1xf32>
    %c0_15 = arith.constant 0 : index
    %c0_16 = arith.constant 0 : index
    %c0_17 = arith.constant 0 : index
    %22 = vector.load %arg8[%c0_15, %c0_16, %c0_17] : memref<1x8x1xf32, #tpu.memory_space<vmem>>, vector<1x8x1xf32>
    tpu.vector_store %arg8[%c0_15, %c0_16, %c0_17], %21 {strides = array<i32>} : memref<1x8x1xf32, #tpu.memory_space<vmem>>, vector<1x8x1xf32>,
    %c0_18 = arith.constant 0 : index
    %c0_19 = arith.constant 0 : index
    %c0_20 = arith.constant 0 : index
    %23 = vector.load %arg9[%c0_18, %c0_19, %c0_20] : memref<1x8x8xf32, #tpu.memory_space<vmem>>, vector<1x8x8xf32>
    %24 = vector.broadcast %13 : vector<1x8x1xf32> to vector<1x8x8xf32>
    %25 = arith.mulf %24, %23 : vector<1x8x8xf32>
    %c0_21 = arith.constant 0 : index
    %c0_22 = arith.constant 0 : index
    %c0_23 = arith.constant 0 : index
    %26 = vector.load %arg5[%c0_21, %c0_22, %c0_23] : memref<1x8x8xf32, #tpu.memory_space<vmem>>, vector<1x8x8xf32>
    "tpu.trace_start"() <{level = 10 : i32, message = "bqk,bkd->bqd"}> : () -> ()
    %cst_24 = arith.constant dense<0.000000e+00> : vector<1x8x8xf32>
    %27 = tpu.matmul %16, %26, %cst_24 {dimension_numbers = #tpu.dot_dimension_numbers<[2], [1], [1], [2], [0, 0, 0, 1, 1, 2], [0], [0]>} : vector<1x8x8xf32>, vector<1x8x8xf32>, vector<1x8x8xf32> -> vector<1x8x8xf32>
    "tpu.trace_stop"() : () -> ()
    %28 = arith.addf %25, %27 : vector<1x8x8xf32>
    %c0_25 = arith.constant 0 : index
    %c0_26 = arith.constant 0 : index
    %c0_27 = arith.constant 0 : index
    %29 = vector.load %arg9[%c0_25, %c0_26, %c0_27] : memref<1x8x8xf32, #tpu.memory_space<vmem>>, vector<1x8x8xf32>
    tpu.vector_store %arg9[%c0_25, %c0_26, %c0_27], %28 {strides = array<i32>} : memref<1x8x8xf32, #tpu.memory_space<vmem>>, vector<1x8x8xf32>,
    %c0_28 = arith.constant 0 : index
    %c0_29 = arith.constant 0 : index
    %c0_30 = arith.constant 0 : index
    %30 = vector.load %arg7[%c0_28, %c0_29, %c0_30] : memref<1x8x1xf32, #tpu.memory_space<vmem>>, vector<1x8x1xf32>
    tpu.vector_store %arg7[%c0_28, %c0_29, %c0_30], %11 {strides = array<i32>} : memref<1x8x1xf32, #tpu.memory_space<vmem>>, vector<1x8x1xf32>,
    %c0_i32_31 = arith.constant 0 : i32
    %31 = arith.cmpi eq, %arg2, %c0_i32_31 : i32
    %32 = arith.extui %31 : i1 to i32
    %c0_i32_32 = arith.constant 0 : i32
    %33 = arith.cmpi ne, %32, %c0_i32_32 : i32
    scf.if %33 {
      %c0_33 = arith.constant 0 : index
      %c0_34 = arith.constant 0 : index
      %c0_35 = arith.constant 0 : index
      %34 = vector.load %arg9[%c0_33, %c0_34, %c0_35] : memref<1x8x8xf32, #tpu.memory_space<vmem>>, vector<1x8x8xf32>
      %c0_36 = arith.constant 0 : index
      %c0_37 = arith.constant 0 : index
      %c0_38 = arith.constant 0 : index
      %35 = vector.load %arg8[%c0_36, %c0_37, %c0_38] : memref<1x8x1xf32, #tpu.memory_space<vmem>>, vector<1x8x1xf32>
      %36 = vector.broadcast %35 : vector<1x8x1xf32> to vector<1x8x8xf32>
      %37 = arith.divf %34, %36 : vector<1x8x8xf32>
      %c0_39 = arith.constant 0 : index
      %c0_40 = arith.constant 0 : index
      %c0_41 = arith.constant 0 : index
      %38 = vector.load %arg6[%c0_39, %c0_40, %c0_41] : memref<1x8x8xf32, #tpu.memory_space<vmem>>, vector<1x8x8xf32>
      tpu.vector_store %arg6[%c0_39, %c0_40, %c0_41], %37 {strides = array<i32>} : memref<1x8x8xf32, #tpu.memory_space<vmem>>, vector<1x8x8xf32>,
    } else {
    }
    return
  }
  func.func @transform_0(%arg0: i32, %arg1: i32, %arg2: i32) -> (i32, i32, i32) {
    %c0_i32 = arith.constant 0 : i32
    %c0_i32_0 = arith.constant 0 : i32
    return %arg0, %arg1, %c0_i32 : i32, i32, i32
  }
  func.func @transform_1(%arg0: i32, %arg1: i32, %arg2: i32) -> (i32, i32, i32) {
    %c0_i32 = arith.constant 0 : i32
    %c0_i32_0 = arith.constant 0 : i32
    return %arg0, %arg2, %c0_i32 : i32, i32, i32
  }
  func.func @transform_2(%arg0: i32, %arg1: i32, %arg2: i32) -> (i32, i32, i32) {
    %c0_i32 = arith.constant 0 : i32
    %c0_i32_0 = arith.constant 0 : i32
    return %arg0, %arg2, %c0_i32 : i32, i32, i32
  }
  func.func @transform_3(%arg0: i32, %arg1: i32, %arg2: i32) -> (i32, i32, i32) {
    %c0_i32 = arith.constant 0 : i32
    %c0_i32_0 = arith.constant 0 : i32
    return %arg0, %arg1, %c0_i32 : i32, i32, i32
  }
}

module attributes {stable_mosaic.version = 11 : i64} {
  func.func @_linear_kernel(%arg0: i32, %arg1: memref<16x64xf32, #tpu.memory_space<vmem>>, %arg2: memref<64x64xf32, #tpu.memory_space<vmem>>, %arg3: memref<1x64xf32, #tpu.memory_space<vmem>>, %arg4: memref<16x64xf32, #tpu.memory_space<vmem>>) attributes {dimension_semantics = [#tpu.dimension_semantics<parallel>], iteration_bounds = array<i64: 1>, scalar_prefetch = 0 : i64, scratch_operands = 0 : i64, tpu.core_type = #tpu.core_type<tc>, window_params = [{transform_indices = @transform_0, window_bounds = array<i64: 16, 64>}, {pipeline_mode = #tpu.pipeline_mode<synchronous>, transform_indices = @transform_1, window_bounds = array<i64: 64, 64>}, {pipeline_mode = #tpu.pipeline_mode<synchronous>, transform_indices = @transform_2, window_bounds = array<i64: 1, 64>}, {transform_indices = @transform_3, window_bounds = array<i64: 16, 64>}]} {
    %c0 = arith.constant 0 : index
    %c0_0 = arith.constant 0 : index
    %0 = vector.load %arg1[%c0, %c0_0] : memref<16x64xf32, #tpu.memory_space<vmem>>, vector<16x64xf32>
    %c0_1 = arith.constant 0 : index
    %c0_2 = arith.constant 0 : index
    %1 = vector.load %arg2[%c0_1, %c0_2] : memref<64x64xf32, #tpu.memory_space<vmem>>, vector<64x64xf32>
    %cst = arith.constant dense<0.000000e+00> : vector<16x64xf32>
    %2 = tpu.matmul %0, %1, %cst {dimension_numbers = #tpu.dot_dimension_numbers<[1], [0], [0], [1], [0, 0, 1, 1], [], []>} : vector<16x64xf32>, vector<64x64xf32>, vector<16x64xf32> -> vector<16x64xf32>
    %c0_3 = arith.constant 0 : index
    %c0_4 = arith.constant 0 : index
    %3 = vector.load %arg3[%c0_3, %c0_4] : memref<1x64xf32, #tpu.memory_space<vmem>>, vector<1x64xf32>
    %4 = vector.broadcast %3 : vector<1x64xf32> to vector<16x64xf32>
    %5 = arith.addf %2, %4 : vector<16x64xf32>
    %c0_5 = arith.constant 0 : index
    %c0_6 = arith.constant 0 : index
    %6 = vector.load %arg4[%c0_5, %c0_6] : memref<16x64xf32, #tpu.memory_space<vmem>>, vector<16x64xf32>
    tpu.vector_store %arg4[%c0_5, %c0_6], %5 {strides = array<i32>} : memref<16x64xf32, #tpu.memory_space<vmem>>, vector<16x64xf32>,
    return
  }
  func.func @transform_0(%arg0: i32) -> (i32, i32) {
    %c0_i32 = arith.constant 0 : i32
    %c0_i32_0 = arith.constant 0 : i32
    return %arg0, %c0_i32 : i32, i32
  }
  func.func @transform_1(%arg0: i32) -> (i32, i32) {
    %c0_i32 = arith.constant 0 : i32
    %c0_i32_0 = arith.constant 0 : i32
    %c0_i32_1 = arith.constant 0 : i32
    return %c0_i32, %c0_i32_0 : i32, i32
  }
  func.func @transform_2(%arg0: i32) -> (i32, i32) {
    %c0_i32 = arith.constant 0 : i32
    %c0_i32_0 = arith.constant 0 : i32
    %c0_i32_1 = arith.constant 0 : i32
    return %c0_i32, %c0_i32_0 : i32, i32
  }
  func.func @transform_3(%arg0: i32) -> (i32, i32) {
    %c0_i32 = arith.constant 0 : i32
    %c0_i32_0 = arith.constant 0 : i32
    return %arg0, %c0_i32 : i32, i32
  }
}

</mosaic_0001>

<bundles_post_ra>
// kernel: attention_pallas.3
= control target key start
LH: loop header
LB: loop body
LE: loop exit
PB: predicated region body
PF: predicated region fallthrough
CT: control target
= control target key end

     0   :  { %8 = vsyncpa [#allocation3], 0  ;;  %s264_s0 = inlined_call_operand.hbm [shape: f32[16,64], index: 0, kind: input, shape index: {}]   ;;  %s265_s1 = inlined_call_operand.hbm [shape: f32[64,192], index: 1, kind: input, shape index: {}]   ;;  %s266_s2 = inlined_call_operand.vmem [shape: f32[1,192], index: 2, kind: input, shape index: {}]   ;;  %s267_s3 = inlined_call_operand.vmem [shape: f32[16,192], index: 3, kind: output, shape index: {}]  }
   0x1   :  { %s14_s14 = sshll.u32 %s264_s0, 4  ;;  %s15_s14 = int_to_ptr.hbm [resolvable:$true] %s14_s14 }
   0x2   :  { %9 = vsyncpa [#allocation5], 0  ;;  %s211_s15 = smov [#allocation2]   ;;  %s27_s19 = sshll.u32 %s265_s1, 4  ;;  %s28_s19 = int_to_ptr.hbm [resolvable:$true] %s27_s19 }
   0x3   :  { %s16_s16 = sshll.u32 %s211_s15, 4  ;;  %s212_s20 = smov 128   ;;  %s17_s16 = int_to_ptr.vmem [resolvable:$true] %s16_s16 }
   0x4   :  { %s213_s21 = smov 8   ;;  %s214_s22 = smov [#allocation4]  }
   0x5   :  { %22 = dma.hbm_to_vmem [thread:$0]  %s15_s14, 256, %s17_s16, [#allocation3], %s212_s20, %s212_s20, %s213_s21  }
   0x6   :  { %s29_s23 = sshll.u32 %s214_s22, 4  ;;  %s215_s24 = smov 256   ;;  %s30_s23 = int_to_ptr.vmem [resolvable:$true] %s29_s23 }
   0x7   :  { %s216_s25 = smov 16  }
   0x8   :  { %35 = dma.hbm_to_vmem [thread:$0]  %s28_s19, 2048, %s30_s23, [#allocation5], %s215_s24, %s215_s24, %s216_s25  }
   0x9   :  { %207 = dma.done.wait [#allocation3], 256  }
   0xa   :  { %208 = vsyncadd [#allocation3], 4294967040 }
   0xb   :  { %209 = dma.done.wait [#allocation5], 2048  }
   0xc   :  { %210 = vsyncadd [#allocation5], 4294965248  ;;  %v62_v0 = vld [vmem:[#allocation4 + $0x70] sm:$0xff]  ;;  %v63_v1 = vld [vmem:[#allocation4 + $0x78] sm:$0xff]  ;;  %vm70_vm0 = vcmask 523264  }
   0xd   :  { %v60_v2 = vld [vmem:[#allocation4 + $0x60] sm:$0xff]  ;;  %137 = vmatpush.msra.mxu2 %v62_v0  ;;  %145 = vmatpush.msra.mxu3 %v63_v1  ;;  %v61_v3 = vld [vmem:[#allocation4 + $0x68] sm:$0xff]  ;;  %v58_v4 = vld [vmem:[#allocation4 + $0x50] sm:$0xff] }
   0xe   :  { %v59_v5 = vld [vmem:[#allocation4 + $0x58] sm:$0xff]  ;;  %85 = vmatpush.msra.mxu0 %v62_v0  ;;  %108 = vmatpush.msra.mxu1 %v63_v1  ;;  %v56_v6 = vld [vmem:[#allocation4 + $0x40] sm:$0xff]  ;;  %v57_v7 = vld [vmem:[#allocation4 + $0x48] sm:$0xff] }
   0xf   :  { %138 = vmatpush.msra.mxu2 %v60_v2  ;;  %146 = vmatpush.msra.mxu3 %v61_v3  ;;  %v54_v8 = vld [vmem:[#allocation4 + $0x30] sm:$0xff]  ;;  %v55_v9 = vld [vmem:[#allocation4 + $0x38] sm:$0xff]  ;;  %v52_v10 = vld [vmem:[#allocation4 + $0x20] sm:$0xff] }
  0x10   :  { %86 = vmatpush.msra.mxu0 %v60_v2  ;;  %109 = vmatpush.msra.mxu1 %v61_v3  ;;  %v53_v11 = vld [vmem:[#allocation4 + $0x28] sm:$0xff]  ;;  %v50_v12 = vld [vmem:[#allocation4 + $0x10] sm:$0xff]  ;;  %v51_v13 = vld [vmem:[#allocation4 + $0x18] sm:$0xff] }
  0x11   :  { %139 = vmatpush.msra.mxu2 %v58_v4  ;;  %147 = vmatpush.msra.mxu3 %v59_v5  ;;  %v48_v14 = vld [vmem:[#allocation4] sm:$0xff]  ;;  %v49_v15 = vld [vmem:[#allocation4 + $0x8] sm:$0xff]  ;;  %v47_v16 = vld [vmem:[#allocation2 + $0x8] sm:$0xff] }
  0x12   :  { %87 = vmatpush.msra.mxu0 %v58_v4  ;;  %110 = vmatpush.msra.mxu1 %v59_v5  ;;  %v46_v17 = vld [vmem:[#allocation2] sm:$0xff] }
  0x13   :  { %140 = vmatpush.msra.mxu2 %v56_v6  ;;  %148 = vmatpush.msra.mxu3 %v57_v7  ;;  %v64_v18 = vld [vmem:[%s266_s2] sm:$0x3] }
  0x14   :  { %88 = vmatpush.msra.mxu0 %v56_v6  ;;  %111 = vmatpush.msra.mxu1 %v57_v7  ;;  %v66_v19 = vperm.slane %v64_v18, 0  ;;  %v67_v20 = vperm.slane %v64_v18, 1 }
  0x15   :  { %141 = vmatpush.msra.mxu2 %v54_v8  ;;  %149 = vmatpush.msra.mxu3 %v55_v9 }
  0x16   :  { %89 = vmatpush.msra.mxu0 %v54_v8  ;;  %112 = vmatpush.msra.mxu1 %v55_v9 }
  0x17   :  { %142 = vmatpush.msra.mxu2 %v52_v10  ;;  %150 = vmatpush.msra.mxu3 %v53_v11 }
  0x18   :  { %90 = vmatpush.msra.mxu0 %v52_v10  ;;  %113 = vmatpush.msra.mxu1 %v53_v11 }
  0x19   :  { %143 = vmatpush.msra.mxu2 %v50_v12  ;;  %151 = vmatpush.msra.mxu3 %v51_v13 }
  0x1a   :  { %91 = vmatpush.msra.mxu0 %v50_v12  ;;  %114 = vmatpush.msra.mxu1 %v51_v13 }
  0x1b   :  { %144 = vmatpush.msra.mxu2 %v48_v14  ;;  %152 = vmatpush.msra.mxu3 %v49_v15 }
  0x1c   :  { %134 = vmatmul.msk.f32.vlgmr.msra.gmra.mxu2 %vm70_vm0, %v47_v16  ;;  %136 = vmatmul.msk.f32.vlgmr.msra.gmra.mxu3 %vm70_vm0, %v47_v16 }
  0x1d   :  { %92 = vmatpush.msra.mxu0 %v48_v14  ;;  %115 = vmatpush.msra.mxu1 %v49_v15 }
  0x1e   :  { %133 = vmatmul.msk.f32.vlgmr.msra.gmra.mxu0 %vm70_vm0, %v46_v17  ;;  %135 = vmatmul.msk.f32.vlgmr.msra.gmra.mxu1 %vm70_vm0, %v46_v17 }
  0x9b   :  { %v94_v21 = vpop.f32.mrf.mxu0  ;;  %v117_v22 = vpop.f32.mrf.mxu1 }
  0x9c   :  { %v95_v23 = vadd.f32 %v94_v21, %v66_v19  ;;  %v118_v24 = vadd.f32 %v117_v22, %v67_v20 }
  0x9e   :  { %123 = vst [vmem:[%s267_s3] sm:$0xff] %v95_v23 }
  0x9f   :  { %v97_v25 = vpop.f32.mrf.mxu2  ;;  %124 = vst.msk [vmem:[%s267_s3 + $0x8] sm:$0xff] %vm70_vm0, %v118_v24  ;;  %v120_v26 = vpop.f32.mrf.mxu3 }
  0xa0   :  { %v98_v27 = vadd.f32 %v97_v25, %v66_v19  ;;  %v121_v28 = vadd.f32 %v120_v26, %v67_v20 }
  0xa2   :  { %125 = vst [vmem:[%s267_s3 + $0x10] sm:$0xff] %v98_v27 }
  0xa3   :  { %126 = vst.msk [vmem:[%s267_s3 + $0x18] sm:$0xff] %vm70_vm0, %v121_v28 }
  0xa4   :  { %131 = vsyncpa [#allocation3], 1 }
  0xa5   :  { %132 = vsyncpa [#allocation5], 1 }

// kernel: attention_pallas.5
= control target key start
LH: loop header
LB: loop body
LE: loop exit
PB: predicated region body
PF: predicated region fallthrough
CT: control target
= control target key end

     0   :  { %s182_s0 = inlined_call_operand.vmem [shape: f32[16,64], index: 0, kind: input, shape index: {}]   ;;  %s183_s1 = inlined_call_operand.vmem [shape: f32[64,64], index: 1, kind: input, shape index: {}]   ;;  %s184_s2 = inlined_call_operand.vmem [shape: f32[1,64], index: 2, kind: input, shape index: {}]   ;;  %s185_s3 = inlined_call_operand.hbm [shape: f32[16,64], index: 3, kind: output, shape index: {}]  }
   0x1   :  { %v24_v0 = vld [vmem:[%s183_s1 + $0x38] sm:$0xff]  ;;  %v23_v1 = vld [vmem:[%s183_s1 + $0x30] sm:$0xff]  ;;  %v22_v2 = vld [vmem:[%s183_s1 + $0x28] sm:$0xff] }
   0x2   :  { %44 = vmatpush.msra.mxu0 %v24_v0  ;;  %81 = vmatpush.msra.mxu1 %v24_v0  ;;  %v21_v3 = vld [vmem:[%s183_s1 + $0x20] sm:$0xff] }
   0x4   :  { %45 = vmatpush.msra.mxu0 %v23_v1  ;;  %82 = vmatpush.msra.mxu1 %v23_v1 }
   0x5   :  { %8 = vsyncpa [#allocation3], 0  ;;  %v20_v4 = vld [vmem:[%s183_s1 + $0x18] sm:$0xff]  ;;  %v19_v5 = vld [vmem:[%s183_s1 + $0x10] sm:$0xff]  ;;  %vm29_vm0 = vcmask 523264   ;;  %s67_s10 = sshll.u32 %s185_s3, 4  ;;  %s68_s10 = int_to_ptr.hbm [resolvable:$true] %s67_s10 }
   0x6   :  { %46 = vmatpush.msra.mxu0 %v22_v2  ;;  %83 = vmatpush.msra.mxu1 %v22_v2  ;;  %v18_v6 = vld [vmem:[%s183_s1 + $0x8] sm:$0xff]  ;;  %v17_v7 = vld [vmem:[%s183_s1] sm:$0xff]  ;;  %s119_s1 = smov [#allocation2]   ;;  %s121_s11 = smov 8  }
   0x7   :  { %v15_v8 = vld [vmem:[%s182_s0] sm:$0xff]  ;;  %v16_v9 = vld [vmem:[%s182_s0 + $0x8] sm:$0xff]  ;;  %s65_s7 = sshll.u32 %s119_s1, 4  ;;  %s120_s0 = smov 128   ;;  %s66_s7 = int_to_ptr.vmem [resolvable:$true] %s65_s7 }
   0x8   :  { %47 = vmatpush.msra.mxu0 %v21_v3  ;;  %84 = vmatpush.msra.mxu1 %v21_v3  ;;  %v92_v10 = vld [vmem:[%s184_s2] ss:$0 sm:$0xff] }
   0xa   :  { %48 = vmatpush.msra.mxu0 %v20_v4  ;;  %85 = vmatpush.msra.mxu1 %v20_v4 }
   0xc   :  { %49 = vmatpush.msra.mxu0 %v19_v5  ;;  %86 = vmatpush.msra.mxu1 %v19_v5 }
   0xe   :  { %50 = vmatpush.msra.mxu0 %v18_v6  ;;  %87 = vmatpush.msra.mxu1 %v18_v6 }
  0x10   :  { %51 = vmatpush.msra.mxu0 %v17_v7  ;;  %88 = vmatpush.msra.mxu1 %v17_v7 }
  0x11   :  { %79 = vmatmul.msk.f32.vlgmr.msra.gmra.mxu0 %vm29_vm0, %v15_v8  ;;  %80 = vmatmul.msk.f32.vlgmr.msra.gmra.mxu1 %vm29_vm0, %v16_v9 }
  0x8e   :  { %v53_v11 = vpop.f32.mrf.mxu0  ;;  %v56_v12 = vpop.f32.mrf.mxu1 }
  0x8f   :  { %v54_v13 = vadd.f32 %v92_v10, %v53_v11  ;;  %v57_v14 = vadd.f32 %v92_v10, %v56_v12 }
  0x91   :  { %59 = vst.msk [vmem:[#allocation2] sm:$0xff] %vm29_vm0, %v54_v13 }
  0x92   :  { %60 = vst.msk [vmem:[#allocation2 + $0x8] sm:$0xff] %vm29_vm0, %v57_v14 }
  0x93   :  { %73 = dma.vmem_to_hbm [thread:$0]  %s66_s7, 256, %s68_s10, [#allocation3], %s120_s0, %s120_s0, %s121_s11  }
  0x94   :  { %117 = dma.done.wait [#allocation3], 256  }
  0x95   :  { %118 = vsyncadd [#allocation3], 4294967040 }
  0x96   :  { %78 = vsyncpa [#allocation3], 1 }

// kernel: attention_pallas.4
= control target key start
LH: loop header
LB: loop body
LE: loop exit
PB: predicated region body
PF: predicated region fallthrough
CT: control target
= control target key end

     0   :  { %s587_s12 = smov 0   ;;  %s589_s13 = smov 0   ;;  %s644_s0 = inlined_call_operand.vmem [shape: f32[16,8,8], index: 0, kind: input, shape index: {}]   ;;  %s645_s1 = inlined_call_operand.vmem [shape: f32[16,8,8], index: 1, kind: input, shape index: {}]   ;;  %s646_s2 = inlined_call_operand.vmem [shape: f32[16,8,8], index: 2, kind: input, shape index: {}]   ;;  %s647_s3 = inlined_call_operand.vmem [shape: f32[16,8,8], index: 3, kind: output, shape index: {}]  }
   0x1   :  { %s591_s14 = smov 0  }
   0x2 LB: > { %s32_s15 = sadd.s32 1, %s558_s13  ;;  %p494_p0 = scmp.ge.s32.totalorder %s562_s14, 1  ;;  %s562_s14 = sphi %s591_s14, %s13_s14   ;;  %s558_s13 = sphi %s589_s13, %s649_s13   ;;  %s554_s12 = sphi %s587_s12, %s648_s12  }
   0x3   : > { %p34_p1 = scmp.ge.s32.totalorder %s32_s15, 16  ;;  %p190_p2 = scmp.lt.s32.totalorder %s562_s14, 17 }
   0x5   : > { %s651_s15 = smov (%p34_p1, %s32_s15), 0  ;;  %p191_p3 = pnand %p494_p0, %p190_p2 }
   0x6   : > { %p232_p4 = scmp.lt.s32.totalorder (!%p191_p3), %s554_s12, 15 }
   0x7   : > { %194 = sbr.rel (%p191_p3) target bundleno = 654 (0x28e), region = 32 }
   0xc   : > { %vm267_vm0 = vcmask 64512   ;;  %v564_v0 = vmov 0.0   ;;  %s653_s12 = smov (!%p232_p4, %s554_s12), 15  ;;  %vm264_vm1 = vcmask 7168   ;;  %v565_v3 = vmov -inf  }
   0xd   : > { %268 = vst.msk [vmem:[#allocation4] sm:$0xff] %vm267_vm0, %v564_v0  ;;  %s606_s16 = sshll.u32 %s653_s12, 3  ;;  %v566_v7 = vmov 0  }
   0xe   : > { %s245_s19 = scalar_lea.vmem %s645_s1, %s606_s16  ;;  %s238_s22 = scalar_lea.vmem %s644_s0, %s606_s16  ;;  %265 = vst.msk [vmem:[#allocation2] sm:$0xff] %vm264_vm1, %v565_v3  ;;  %531 = vset.pattern.permute.xlu0 %v566_v7  ;;  %533 = vset.pattern.permute.xlu2 %v566_v7 }
   0xf   : > { %v270_v1 = vld [vmem:[%s245_s19] sm:$0xff]  ;;  %266 = vst.msk [vmem:[#allocation3] sm:$0xff] %vm264_vm1, %v564_v0  ;;  %532 = vset.pattern.permute.xlu1 %v566_v7  ;;  %s252_s25 = scalar_lea.vmem %s646_s2, %s606_s16  ;;  %s259_s28 = scalar_lea.vmem %s647_s3, %s606_s16 }
  0x10   : > { %499 = vmatpush.xpose.msk.msra.mxu0 %vm267_vm0, %v270_v1  ;;  %v269_v2 = vld [vmem:[%s238_s22] sm:$0xff] }
  0x11   : > { %v330_v14 = vld [vmem:[%s252_s25] sm:$0xff] }
  0x12   : > { %349 = vmatpush.msra.mxu1 %v330_v14 }
  0x13   : > { %500 = vmatmul.msk.f32.vlgmr.msra.gmra.mxu0 %vm267_vm0, %v269_v2 }
  0x14   : > { %v323_v24 = vld [vmem:[#allocation4] sm:$0xff] }
  0x15   : > { %v299_v8 = vld [vmem:[#allocation2] sm:$0xff] }
  0x16   : > { %v315_v20 = vld [vmem:[#allocation3] sm:$0xff] }
  0x90   : > { %v295_v4 = vpop.f32.mrf.mxu0 }
  0x91   : > { %v298_v5 = vmul.f32 0.35355338, %v295_v4 }
  0x93   : > { %v300_v6 = vsel %vm267_vm0, %v298_v5, -inf }
  0x94   : > { %301 = vmax.xlane.f32.xlu0 %v300_v6 }
 0x107   : > { %v302_v9 = vpop.xlane.xlu0 %301 }
 0x108   : > { %v303_v10 = vmax.f32 %v299_v8, %v302_v9 }
 0x10a   : > { %v304_v11 = vsub.f32 %v299_v8, %v303_v10  ;;  %356 = vst.msk [vmem:[#allocation2] sm:$0xff] %vm264_vm1, %v303_v10  ;;  %309 = vperm.xlu0 %531, %v303_v10  }
 0x10c   : > { %v305_v12 = vmul.f32 1.442695, %v304_v11 }
 0x10e   : > { %534 = vpow2.f32 %v305_v12 }
 0x114   : > { %v535_v13 = vpop.eup %534 }
 0x115   : > { %326 = vperm.xlu2 %533, %v535_v13   ;;  %v316_v21 = vmul.f32 %v535_v13, %v315_v20 }
 0x16f   : > { %v327_v25 = vpop.permute.xlu2 %326 }
 0x170   : > { %v329_v26 = vmul.f32 %v327_v25, %v323_v24 }
 0x17c   : > { %v310_v15 = vpop.permute.xlu0 %309 }
 0x17d   : > { %v312_v16 = vsub.f32 %v298_v5, %v310_v15 }
 0x17f   : > { %v313_v17 = vmul.f32 1.442695, %v312_v16 }
 0x181   : > { %536 = vpow2.f32 %v313_v17 }
 0x187   : > { %v537_v18 = vpop.eup %536 }
 0x188   : > { %501 = vmatmul.msk.f32.vlgmr.msra.gmra.mxu1 %vm267_vm0, %v537_v18  ;;  %v317_v19 = vsel %vm267_vm0, %v537_v18, 0.0 }
 0x189   : > { %318 = vadd.xlane.f32.xlu1 %v317_v19 }
 0x1fc   : > { %v319_v22 = vpop.xlane.xlu1 %318 }
 0x1fd   : > { %v320_v23 = vadd.f32 %v319_v22, %v316_v21 }
 0x1ff   : > { %322 = vst.msk [vmem:[#allocation3] sm:$0xff] %vm264_vm1, %v320_v23 }
 0x205   : > { %v351_v27 = vpop.f32.mrf.mxu1 }
 0x206   : > { %v354_v28 = vadd.f32 %v351_v27, %v329_v26  ;;  %v361_v29 = vld [vmem:[#allocation3] sm:$0xff] }
 0x207   : > { %364 = vperm.xlu1 %532, %v361_v29  }
 0x208   : > { %355 = vst.msk [vmem:[#allocation4] sm:$0xff] %vm267_vm0, %v354_v28 }
 0x20f   : > { %v360_v40 = vld [vmem:[#allocation4] sm:$0xff] }
 0x279   : > { %v365_v30 = vpop.permute.xlu1 %364 }
 0x27a   : > { %538 = vrcp.f32 %v365_v30  ;;  %v378_v34 = vand.u32 2147483648, %v365_v30  ;;  %v376_v36 = vand.u32 2147483647, %v365_v30  ;;  %vm372_vm3 = vweird.f32 %v365_v30 }
 0x27c   : > { %v379_v38 = vor.u32 1.1754944e-38, %v378_v34  ;;  %vm377_vm5 = vcmp.eq.f32.partialorder %v376_v36, 8.507059e+37 }
 0x280   : > { %v539_v31 = vpop.eup %538 }
 0x281   : > { %v368_v32 = vmul.f32 %v539_v31, %v365_v30  ;;  %vm373_vm2 = vweird.f32 %v539_v31 }
 0x282   : > { %vm374_vm4 = vmor %vm372_vm3, %vm373_vm2 }
 0x283   : > { %v369_v33 = vsub.f32 1.0, %v368_v32 }
 0x285   : > { %v370_v35 = vmul.f32 %v539_v31, %v369_v33 }
 0x287   : > { %v371_v37 = vadd.f32 %v539_v31, %v370_v35 }
 0x289   : > { %v375_v39 = vsel %vm374_vm4, %v539_v31, %v371_v37 }
 0x28a   : > { %v380_v41 = vsel %vm377_vm5, %v379_v38, %v375_v39 }
 0x28b   : > { %v381_v42 = vmul.f32 %v380_v41, %v360_v40 }
 0x28d   : > { %382 = vst.msk [vmem:[%s259_s28] sm:$0xff] %vm267_vm0, %v381_v42 }
 0x28e PF: > { %s13_s14 = sadd.s32 1, %s562_s14   ;;  %s648_s12 = smov %s558_s13 }
 0x28f   : > { %p10_p5 = scmp.ge.s32.totalorder %s13_s14, 18   ;;  %s649_s13 = smov %s651_s15 }
 0x291   :  { %12 = sbr.rel (!%p10_p5) target bundleno = 2 (0x2), region = 76 }

</bundles_post_ra>
